<compile_context>
chip_gen: v5e
topology: v5e:2x2
jax: 0.10.0
libtpu: 0.0.40
codegen_flags: <defaults>
</compile_context>

<pallas_src>
import functools
from typing import NamedTuple

import jax
import jax.numpy as jnp
from jax import lax
from jax.experimental import pallas as pl
from jax.experimental.pallas import tpu as pltpu


def _round_up(n, m):
    return ((n + m - 1) // m) * m


# ---------------------------------------------------------------------------
# Kernel
# ---------------------------------------------------------------------------
def _mlp_kernel(x_ref, w1_ref, b1_ref, w2_ref, b2_ref, w3t_ref, b3t_ref, o_ref):
    # x arrives f32; cast to bf16 in-kernel (VPU op that hides under MXU/DMA)
    # instead of paying a separate XLA pad+cast pass over x in HBM.
    x = x_ref[...].astype(jnp.bfloat16)
    h = jnp.dot(x, w1_ref[...], preferred_element_type=jnp.float32)
    h = jnp.maximum(h + b1_ref[...], 0.0)
    h = jnp.dot(h.astype(jnp.bfloat16), w2_ref[...],
                preferred_element_type=jnp.float32)
    h = jnp.maximum(h + b2_ref[...], 0.0)
    # Last layer in transposed form:
    #   [out_rows, hidden] (contract dim 1)  x  [tile_b, hidden] (contract dim 1)
    #   -> [out_rows, tile_b]
    # Keeps the output store lane-dense over the batch axis (tile_b is a
    # multiple of 128) instead of a 128-lane-padded column per row.
    o_t = lax.dot_general(
        w3t_ref[...], h.astype(jnp.bfloat16),
        dimension_numbers=(((1,), (1,)), ((), ())),
        preferred_element_type=jnp.float32)
    o_ref[...] = (o_t + b3t_ref[...]).astype(o_ref.dtype)


# ---------------------------------------------------------------------------
# Parameter preparation (done once, outside the per-call path)
# ---------------------------------------------------------------------------
class PreparedMLP(NamedTuple):
    w1: jax.Array    # [in_dim, hidden_p]   bf16
    b1: jax.Array    # [1, hidden_p]        f32
    w2: jax.Array    # [hidden_p, hidden_p] bf16
    b2: jax.Array    # [1, hidden_p]        f32
    w3t: jax.Array   # [out_rows, hidden_p] bf16  (transposed last layer)
    b3t: jax.Array   # [out_rows, 1]        f32
    out_dim: int


def prepare_params(w1, b1, w2, b2, w3, b3):
    """Pad + cast parameters once into the kernel layout (cache the result).

    Feature dims are zero-padded to lane-dense multiples of 128 (numerically
    exact: zero weights/biases + ReLU(0)=0 contribute nothing to real
    columns).  The last layer is stored transposed so the kernel emits a
    lane-dense (out_rows, batch) output.
    """
    in_dim, hidden = w1.shape
    out_dim = w3.shape[1]
    hidden_p = _round_up(hidden, 128)
    out_rows = _round_up(out_dim, 8)   # sublane-aligned rows of the output

    def pad2(a, rows, cols):
        return jnp.pad(a, ((0, rows - a.shape[0]), (0, cols - a.shape[1])))

    w1p = pad2(w1, in_dim, hidden_p).astype(jnp.bfloat16)
    w2p = pad2(w2, hidden_p, hidden_p).astype(jnp.bfloat16)
    w3tp = pad2(w3.T, out_rows, hidden_p).astype(jnp.bfloat16)
    b1p = pad2(b1.reshape(1, -1), 1, hidden_p).astype(jnp.float32)
    b2p = pad2(b2.reshape(1, -1), 1, hidden_p).astype(jnp.float32)
    b3tp = pad2(b3.reshape(-1, 1), out_rows, 1).astype(jnp.float32)
    return PreparedMLP(w1p, b1p, w2p, b2p, w3tp, b3tp, out_dim)


# ---------------------------------------------------------------------------
# Forward builder
# ---------------------------------------------------------------------------
def _pick_tile_b(batch):
    # Large batches: 512-row tiles (~85% of HBM roofline, fills the 256-row
    # MXU on v6e/v7x); keep >=2 tiles when possible so the "parallel" batch
    # axis can be split across both v7x TensorCores.
    if batch >= 1024:
        return 512
    if batch >= 256:
        return 256
    return _round_up(max(batch, 1), 128)


def _vmem_limit_bytes(in_dim, hidden_p, out_rows, tile_b, weight_buffers):
    f32, bf16 = 4, 2
    weights = (in_dim * hidden_p + hidden_p * hidden_p
               + out_rows * hidden_p) * bf16
    biases = (2 * 8 * hidden_p + 8 * 128) * f32              # sublane-padded
    streamed = 2 * (tile_b * in_dim + out_rows * tile_b) * f32  # x/out, 2 bufs
    interm = 4 * tile_b * hidden_p * f32                         # h temporaries
    need = weight_buffers * (weights + biases) + streamed + interm
    # Generous headroom, but never above v7x's 64 MiB physical VMEM.
    return int(min(max(2 * need, 32 * 1024 * 1024), 64 * 1024 * 1024))


@functools.lru_cache(maxsize=None)
def _build_forward(batch, in_dim, hidden_p, out_rows, out_dim,
                   single_buffer_weights):
    tile_b = _pick_tile_b(batch)
    batch_p = _round_up(batch, tile_b)
    grid = (batch_p // tile_b,)

    # Weight/bias blocks are grid-invariant (index_map -> (0, 0)); request a
    # single VMEM buffer for them so the resident footprint is 1x, not 2x.
    resident_kwargs = (
        {"pipeline_mode": pl.Buffered(1)} if single_buffer_weights else {})

    def resident(shape):
        return pl.BlockSpec(shape, lambda i: (0, 0), **resident_kwargs)

    call = pl.pallas_call(
        _mlp_kernel,
        out_shape=jax.ShapeDtypeStruct((out_rows, batch_p), jnp.float32),
        grid=grid,
        in_specs=[
            # x: tiled over the batch grid axis, stays f32 (cast in-kernel).
            pl.BlockSpec((tile_b, in_dim), lambda i: (i, 0)),
            resident((in_dim, hidden_p)),    # w1
            resident((1, hidden_p)),         # b1
            resident((hidden_p, hidden_p)),  # w2
            resident((1, hidden_p)),         # b2
            resident((out_rows, hidden_p)),  # w3 (transposed)
            resident((out_rows, 1)),         # b3 (transposed)
        ],
        # Transposed output: lane axis = batch tile (lane-dense, unmasked vst).
        out_specs=pl.BlockSpec((out_rows, tile_b), lambda i: (0, i)),
        compiler_params=pltpu.CompilerParams(
            # Batch tiles are independent -> megacore-shardable on v7x
            # (~no effect on v5e/v6e, harmless there).
            dimension_semantics=("parallel",),
            vmem_limit_bytes=_vmem_limit_bytes(
                in_dim, hidden_p, out_rows, tile_b,
                1 if single_buffer_weights else 2)),
    )

    @jax.jit
    def fwd(x, w1, b1, w2, b2, w3t, b3t):
        if batch_p != batch:
            # Only pay a pad copy when the tile does not divide the batch.
            x = jnp.pad(x, ((0, batch_p - batch), (0, 0)))
        out_t = call(x, w1, b1, w2, b2, w3t, b3t)      # (out_rows, batch_p)
        out = out_t[:out_dim, :batch].T                # (batch, out_dim)
        return jnp.squeeze(out)                        # mimic torch .squeeze()

    return fwd


_SINGLE_BUFFER_WEIGHTS_OK = True   # flipped off if pl.Buffered(1) unsupported


def mlp_forward(x, params: PreparedMLP):
    """MLP forward: x [B, in_dim] -> squeeze(lin3(relu(lin2(relu(lin1(x))))))."""
    global _SINGLE_BUFFER_WEIGHTS_OK
    batch, in_dim = x.shape
    hidden_p = params.w1.shape[1]
    out_rows = params.w3t.shape[0]
    tensors = (params.w1, params.b1, params.w2, params.b2,
               params.w3t, params.b3t)
    key = (batch, in_dim, hidden_p, out_rows, params.out_dim)

    if _SINGLE_BUFFER_WEIGHTS_OK:
        try:
            return _build_forward(*key, True)(x, *tensors)
        except Exception:
            # This jax build rejected single-buffered resident weights; fall
            # back to the default double-buffered pipeline (same semantics).
            _SINGLE_BUFFER_WEIGHTS_OK = False
    return _build_forward(*key, False)(x, *tensors)


# ---------------------------------------------------------------------------
# Init (mirrors nn.Linear defaults; [in, out] layout, 1-D biases)
# ---------------------------------------------------------------------------
def init_params(key, in_dim, hidden_dim, out_dim):
    keys = jax.random.split(key, 6)

    def linear(kw, kb, fan_in, fan_out):
        bound = 1.0 / jnp.sqrt(fan_in)
        w = jax.random.uniform(kw, (fan_in, fan_out), jnp.float32, -bound, bound)
        b = jax.random.uniform(kb, (fan_out,), jnp.float32, -bound, bound)
        return w, b

    w1, b1 = linear(keys[0], keys[1], in_dim, hidden_dim)
    w2, b2 = linear(keys[2], keys[3], hidden_dim, hidden_dim)
    w3, b3 = linear(keys[4], keys[5], hidden_dim, out_dim)
    return w1, b1, w2, b2, w3, b3


if __name__ == "__main__":
    # Small shapes consistent with the module's forward.
    batch, in_dim, hidden_dim, out_dim = 8, 16, 32, 1

    key = jax.random.PRNGKey(0)
    k_x, k_p = jax.random.split(key)
    x = jax.random.normal(k_x, (batch, in_dim), dtype=jnp.float32)
    raw = init_params(k_p, in_dim, hidden_dim, out_dim)

    # Pad/cast weights ONCE (outside the per-call path) and reuse.
    params = prepare_params(*raw)

    out = mlp_forward(x, params)
    jax.block_until_ready(out)

    # Plain f32 JAX reference (kernel uses bf16 matmul inputs -> loose tol).
    w1, b1, w2, b2, w3, b3 = raw
    h = jnp.maximum(x @ w1 + b1, 0.0)
    h = jnp.maximum(h @ w2 + b2, 0.0)
    ref = jnp.squeeze(h @ w3 + b3)

    assert out.shape == ref.shape == (batch,), (out.shape, ref.shape)
    assert jnp.allclose(out, ref, atol=3e-2, rtol=3e-2), (out, ref)

    print("KERNEL_OK")
</pallas_src>

<mosaic_0001>
module attributes {stable_mosaic.version = 11 : i64} {
  func.func @_mlp_kernel(%arg0: i32, %arg1: memref<128x16xf32, #tpu.memory_space<vmem>>, %arg2: memref<16x128xbf16, #tpu.memory_space<vmem>>, %arg3: memref<1x128xf32, #tpu.memory_space<vmem>>, %arg4: memref<128x128xbf16, #tpu.memory_space<vmem>>, %arg5: memref<1x128xf32, #tpu.memory_space<vmem>>, %arg6: memref<8x128xbf16, #tpu.memory_space<vmem>>, %arg7: memref<8x1xf32, #tpu.memory_space<vmem>>, %arg8: memref<8x128xf32, #tpu.memory_space<vmem>>) attributes {dimension_semantics = [#tpu.dimension_semantics<parallel>], iteration_bounds = array<i64: 1>, scalar_prefetch = 0 : i64, scratch_operands = 0 : i64, tpu.core_type = #tpu.core_type<tc>, window_params = [{transform_indices = @transform_0, window_bounds = array<i64: 128, 16>}, {pipeline_mode = #tpu.pipeline_mode<synchronous>, transform_indices = @transform_1, window_bounds = array<i64: 16, 128>}, {pipeline_mode = #tpu.pipeline_mode<synchronous>, transform_indices = @transform_2, window_bounds = array<i64: 1, 128>}, {pipeline_mode = #tpu.pipeline_mode<synchronous>, transform_indices = @transform_3, window_bounds = array<i64: 128, 128>}, {pipeline_mode = #tpu.pipeline_mode<synchronous>, transform_indices = @transform_4, window_bounds = array<i64: 1, 128>}, {pipeline_mode = #tpu.pipeline_mode<synchronous>, transform_indices = @transform_5, window_bounds = array<i64: 8, 128>}, {pipeline_mode = #tpu.pipeline_mode<synchronous>, transform_indices = @transform_6, window_bounds = array<i64: 8, 1>}, {transform_indices = @transform_7, window_bounds = array<i64: 8, 128>}]} {
    %c0 = arith.constant 0 : index
    %c0_0 = arith.constant 0 : index
    %0 = vector.load %arg1[%c0, %c0_0] : memref<128x16xf32, #tpu.memory_space<vmem>>, vector<128x16xf32>
    %1 = arith.truncf %0 : vector<128x16xf32> to vector<128x16xbf16>
    %c0_1 = arith.constant 0 : index
    %c0_2 = arith.constant 0 : index
    %2 = vector.load %arg2[%c0_1, %c0_2] : memref<16x128xbf16, #tpu.memory_space<vmem>>, vector<16x128xbf16>
    %cst = arith.constant dense<0.000000e+00> : vector<128x128xf32>
    %3 = tpu.matmul %1, %2, %cst {dimension_numbers = #tpu.dot_dimension_numbers<[1], [0], [0], [1], [0, 0, 1, 1], [], []>} : vector<128x16xbf16>, vector<16x128xbf16>, vector<128x128xf32> -> vector<128x128xf32>
    %c0_3 = arith.constant 0 : index
    %c0_4 = arith.constant 0 : index
    %4 = vector.load %arg3[%c0_3, %c0_4] : memref<1x128xf32, #tpu.memory_space<vmem>>, vector<1x128xf32>
    %5 = vector.broadcast %4 : vector<1x128xf32> to vector<128x128xf32>
    %6 = arith.addf %3, %5 : vector<128x128xf32>
    %cst_5 = arith.constant 0.000000e+00 : f32
    %7 = vector.broadcast %cst_5 : f32 to vector<128x128xf32>
    %8 = arith.maximumf %6, %7 : vector<128x128xf32>
    %9 = arith.truncf %8 : vector<128x128xf32> to vector<128x128xbf16>
    %c0_6 = arith.constant 0 : index
    %c0_7 = arith.constant 0 : index
    %10 = vector.load %arg4[%c0_6, %c0_7] : memref<128x128xbf16, #tpu.memory_space<vmem>>, vector<128x128xbf16>
    %cst_8 = arith.constant dense<0.000000e+00> : vector<128x128xf32>
    %11 = tpu.matmul %9, %10, %cst_8 {dimension_numbers = #tpu.dot_dimension_numbers<[1], [0], [0], [1], [0, 0, 1, 1], [], []>} : vector<128x128xbf16>, vector<128x128xbf16>, vector<128x128xf32> -> vector<128x128xf32>
    %c0_9 = arith.constant 0 : index
    %c0_10 = arith.constant 0 : index
    %12 = vector.load %arg5[%c0_9, %c0_10] : memref<1x128xf32, #tpu.memory_space<vmem>>, vector<1x128xf32>
    %13 = vector.broadcast %12 : vector<1x128xf32> to vector<128x128xf32>
    %14 = arith.addf %11, %13 : vector<128x128xf32>
    %cst_11 = arith.constant 0.000000e+00 : f32
    %15 = vector.broadcast %cst_11 : f32 to vector<128x128xf32>
    %16 = arith.maximumf %14, %15 : vector<128x128xf32>
    %c0_12 = arith.constant 0 : index
    %c0_13 = arith.constant 0 : index
    %17 = vector.load %arg6[%c0_12, %c0_13] : memref<8x128xbf16, #tpu.memory_space<vmem>>, vector<8x128xbf16>
    %18 = arith.truncf %16 : vector<128x128xf32> to vector<128x128xbf16>
    %cst_14 = arith.constant dense<0.000000e+00> : vector<8x128xf32>
    %19 = tpu.matmul %17, %18, %cst_14 {dimension_numbers = #tpu.dot_dimension_numbers<[1], [1], [0], [0], [0, 0, 1, 0], [], []>} : vector<8x128xbf16>, vector<128x128xbf16>, vector<8x128xf32> -> vector<8x128xf32>
    %c0_15 = arith.constant 0 : index
    %c0_16 = arith.constant 0 : index
    %20 = vector.load %arg7[%c0_15, %c0_16] : memref<8x1xf32, #tpu.memory_space<vmem>>, vector<8x1xf32>
    %21 = vector.broadcast %20 : vector<8x1xf32> to vector<8x128xf32>
    %22 = arith.addf %19, %21 : vector<8x128xf32>
    %c0_17 = arith.constant 0 : index
    %c0_18 = arith.constant 0 : index
    %23 = vector.load %arg8[%c0_17, %c0_18] : memref<8x128xf32, #tpu.memory_space<vmem>>, vector<8x128xf32>
    tpu.vector_store %arg8[%c0_17, %c0_18], %22 {strides = array<i32>} : memref<8x128xf32, #tpu.memory_space<vmem>>, vector<8x128xf32>,
    return
  }
  func.func @transform_0(%arg0: i32) -> (i32, i32) {
    %c0_i32 = arith.constant 0 : i32
    %c0_i32_0 = arith.constant 0 : i32
    return %arg0, %c0_i32 : i32, i32
  }
  func.func @transform_1(%arg0: i32) -> (i32, i32) {
    %c0_i32 = arith.constant 0 : i32
    %c0_i32_0 = arith.constant 0 : i32
    %c0_i32_1 = arith.constant 0 : i32
    return %c0_i32, %c0_i32_0 : i32, i32
  }
  func.func @transform_2(%arg0: i32) -> (i32, i32) {
    %c0_i32 = arith.constant 0 : i32
    %c0_i32_0 = arith.constant 0 : i32
    %c0_i32_1 = arith.constant 0 : i32
    return %c0_i32, %c0_i32_0 : i32, i32
  }
  func.func @transform_3(%arg0: i32) -> (i32, i32) {
    %c0_i32 = arith.constant 0 : i32
    %c0_i32_0 = arith.constant 0 : i32
    %c0_i32_1 = arith.constant 0 : i32
    return %c0_i32, %c0_i32_0 : i32, i32
  }
  func.func @transform_4(%arg0: i32) -> (i32, i32) {
    %c0_i32 = arith.constant 0 : i32
    %c0_i32_0 = arith.constant 0 : i32
    %c0_i32_1 = arith.constant 0 : i32
    return %c0_i32, %c0_i32_0 : i32, i32
  }
  func.func @transform_5(%arg0: i32) -> (i32, i32) {
    %c0_i32 = arith.constant 0 : i32
    %c0_i32_0 = arith.constant 0 : i32
    %c0_i32_1 = arith.constant 0 : i32
    return %c0_i32, %c0_i32_0 : i32, i32
  }
  func.func @transform_6(%arg0: i32) -> (i32, i32) {
    %c0_i32 = arith.constant 0 : i32
    %c0_i32_0 = arith.constant 0 : i32
    %c0_i32_1 = arith.constant 0 : i32
    return %c0_i32, %c0_i32_0 : i32, i32
  }
  func.func @transform_7(%arg0: i32) -> (i32, i32) {
    %c0_i32 = arith.constant 0 : i32
    %c0_i32_0 = arith.constant 0 : i32
    return %c0_i32, %arg0 : i32, i32
  }
}

module attributes {stable_mosaic.version = 11 : i64} {
  func.func @_mlp_kernel(%arg0: i32, %arg1: memref<128x16xf32, #tpu.memory_space<vmem>>, %arg2: memref<16x128xbf16, #tpu.memory_space<vmem>>, %arg3: memref<1x128xf32, #tpu.memory_space<vmem>>, %arg4: memref<128x128xbf16, #tpu.memory_space<vmem>>, %arg5: memref<1x128xf32, #tpu.memory_space<vmem>>, %arg6: memref<8x128xbf16, #tpu.memory_space<vmem>>, %arg7: memref<8x1xf32, #tpu.memory_space<vmem>>, %arg8: memref<8x128xf32, #tpu.memory_space<vmem>>) attributes {dimension_semantics = [#tpu.dimension_semantics<parallel>], iteration_bounds = array<i64: 1>, scalar_prefetch = 0 : i64, scratch_operands = 0 : i64, tpu.core_type = #tpu.core_type<tc>, window_params = [{transform_indices = @transform_0, window_bounds = array<i64: 128, 16>}, {pipeline_mode = #tpu.pipeline_mode<synchronous>, transform_indices = @transform_1, window_bounds = array<i64: 16, 128>}, {pipeline_mode = #tpu.pipeline_mode<synchronous>, transform_indices = @transform_2, window_bounds = array<i64: 1, 128>}, {pipeline_mode = #tpu.pipeline_mode<synchronous>, transform_indices = @transform_3, window_bounds = array<i64: 128, 128>}, {pipeline_mode = #tpu.pipeline_mode<synchronous>, transform_indices = @transform_4, window_bounds = array<i64: 1, 128>}, {pipeline_mode = #tpu.pipeline_mode<synchronous>, transform_indices = @transform_5, window_bounds = array<i64: 8, 128>}, {pipeline_mode = #tpu.pipeline_mode<synchronous>, transform_indices = @transform_6, window_bounds = array<i64: 8, 1>}, {transform_indices = @transform_7, window_bounds = array<i64: 8, 128>}]} {
    %c0 = arith.constant 0 : index
    %c0_0 = arith.constant 0 : index
    %0 = vector.load %arg1[%c0, %c0_0] : memref<128x16xf32, #tpu.memory_space<vmem>>, vector<128x16xf32>
    %1 = arith.truncf %0 : vector<128x16xf32> to vector<128x16xbf16>
    %c0_1 = arith.constant 0 : index
    %c0_2 = arith.constant 0 : index
    %2 = vector.load %arg2[%c0_1, %c0_2] : memref<16x128xbf16, #tpu.memory_space<vmem>>, vector<16x128xbf16>
    %cst = arith.constant dense<0.000000e+00> : vector<128x128xf32>
    %3 = tpu.matmul %1, %2, %cst {dimension_numbers = #tpu.dot_dimension_numbers<[1], [0], [0], [1], [0, 0, 1, 1], [], []>} : vector<128x16xbf16>, vector<16x128xbf16>, vector<128x128xf32> -> vector<128x128xf32>
    %c0_3 = arith.constant 0 : index
    %c0_4 = arith.constant 0 : index
    %4 = vector.load %arg3[%c0_3, %c0_4] : memref<1x128xf32, #tpu.memory_space<vmem>>, vector<1x128xf32>
    %5 = vector.broadcast %4 : vector<1x128xf32> to vector<128x128xf32>
    %6 = arith.addf %3, %5 : vector<128x128xf32>
    %cst_5 = arith.constant 0.000000e+00 : f32
    %7 = vector.broadcast %cst_5 : f32 to vector<128x128xf32>
    %8 = arith.maximumf %6, %7 : vector<128x128xf32>
    %9 = arith.truncf %8 : vector<128x128xf32> to vector<128x128xbf16>
    %c0_6 = arith.constant 0 : index
    %c0_7 = arith.constant 0 : index
    %10 = vector.load %arg4[%c0_6, %c0_7] : memref<128x128xbf16, #tpu.memory_space<vmem>>, vector<128x128xbf16>
    %cst_8 = arith.constant dense<0.000000e+00> : vector<128x128xf32>
    %11 = tpu.matmul %9, %10, %cst_8 {dimension_numbers = #tpu.dot_dimension_numbers<[1], [0], [0], [1], [0, 0, 1, 1], [], []>} : vector<128x128xbf16>, vector<128x128xbf16>, vector<128x128xf32> -> vector<128x128xf32>
    %c0_9 = arith.constant 0 : index
    %c0_10 = arith.constant 0 : index
    %12 = vector.load %arg5[%c0_9, %c0_10] : memref<1x128xf32, #tpu.memory_space<vmem>>, vector<1x128xf32>
    %13 = vector.broadcast %12 : vector<1x128xf32> to vector<128x128xf32>
    %14 = arith.addf %11, %13 : vector<128x128xf32>
    %cst_11 = arith.constant 0.000000e+00 : f32
    %15 = vector.broadcast %cst_11 : f32 to vector<128x128xf32>
    %16 = arith.maximumf %14, %15 : vector<128x128xf32>
    %c0_12 = arith.constant 0 : index
    %c0_13 = arith.constant 0 : index
    %17 = vector.load %arg6[%c0_12, %c0_13] : memref<8x128xbf16, #tpu.memory_space<vmem>>, vector<8x128xbf16>
    %18 = arith.truncf %16 : vector<128x128xf32> to vector<128x128xbf16>
    %cst_14 = arith.constant dense<0.000000e+00> : vector<8x128xf32>
    %19 = tpu.matmul %17, %18, %cst_14 {dimension_numbers = #tpu.dot_dimension_numbers<[1], [1], [0], [0], [0, 0, 1, 0], [], []>} : vector<8x128xbf16>, vector<128x128xbf16>, vector<8x128xf32> -> vector<8x128xf32>
    %c0_15 = arith.constant 0 : index
    %c0_16 = arith.constant 0 : index
    %20 = vector.load %arg7[%c0_15, %c0_16] : memref<8x1xf32, #tpu.memory_space<vmem>>, vector<8x1xf32>
    %21 = vector.broadcast %20 : vector<8x1xf32> to vector<8x128xf32>
    %22 = arith.addf %19, %21 : vector<8x128xf32>
    %c0_17 = arith.constant 0 : index
    %c0_18 = arith.constant 0 : index
    %23 = vector.load %arg8[%c0_17, %c0_18] : memref<8x128xf32, #tpu.memory_space<vmem>>, vector<8x128xf32>
    tpu.vector_store %arg8[%c0_17, %c0_18], %22 {strides = array<i32>} : memref<8x128xf32, #tpu.memory_space<vmem>>, vector<8x128xf32>,
    return
  }
  func.func @transform_0(%arg0: i32) -> (i32, i32) {
    %c0_i32 = arith.constant 0 : i32
    %c0_i32_0 = arith.constant 0 : i32
    return %arg0, %c0_i32 : i32, i32
  }
  func.func @transform_1(%arg0: i32) -> (i32, i32) {
    %c0_i32 = arith.constant 0 : i32
    %c0_i32_0 = arith.constant 0 : i32
    %c0_i32_1 = arith.constant 0 : i32
    return %c0_i32, %c0_i32_0 : i32, i32
  }
  func.func @transform_2(%arg0: i32) -> (i32, i32) {
    %c0_i32 = arith.constant 0 : i32
    %c0_i32_0 = arith.constant 0 : i32
    %c0_i32_1 = arith.constant 0 : i32
    return %c0_i32, %c0_i32_0 : i32, i32
  }
  func.func @transform_3(%arg0: i32) -> (i32, i32) {
    %c0_i32 = arith.constant 0 : i32
    %c0_i32_0 = arith.constant 0 : i32
    %c0_i32_1 = arith.constant 0 : i32
    return %c0_i32, %c0_i32_0 : i32, i32
  }
  func.func @transform_4(%arg0: i32) -> (i32, i32) {
    %c0_i32 = arith.constant 0 : i32
    %c0_i32_0 = arith.constant 0 : i32
    %c0_i32_1 = arith.constant 0 : i32
    return %c0_i32, %c0_i32_0 : i32, i32
  }
  func.func @transform_5(%arg0: i32) -> (i32, i32) {
    %c0_i32 = arith.constant 0 : i32
    %c0_i32_0 = arith.constant 0 : i32
    %c0_i32_1 = arith.constant 0 : i32
    return %c0_i32, %c0_i32_0 : i32, i32
  }
  func.func @transform_6(%arg0: i32) -> (i32, i32) {
    %c0_i32 = arith.constant 0 : i32
    %c0_i32_0 = arith.constant 0 : i32
    %c0_i32_1 = arith.constant 0 : i32
    return %c0_i32, %c0_i32_0 : i32, i32
  }
  func.func @transform_7(%arg0: i32) -> (i32, i32) {
    %c0_i32 = arith.constant 0 : i32
    %c0_i32_0 = arith.constant 0 : i32
    return %c0_i32, %arg0 : i32, i32
  }
}

</mosaic_0001>

<bundles_post_ra>
// kernel: fwd.1
= control target key start
LH: loop header
LB: loop body
LE: loop exit
PB: predicated region body
PF: predicated region fallthrough
CT: control target
= control target key end

     0   :  { %vm63_vm0 = vcmask 130048   ;;  %s531_s1 = inlined_call_operand.vmem [shape: bf16[16,128], index: 1, kind: input, shape index: {}]   ;;  %s532_s0 = inlined_call_operand.vmem [shape: f32[128,16], index: 0, kind: input, shape index: {}]   ;;  %s533_s2 = inlined_call_operand.vmem [shape: f32[1,128], index: 2, kind: input, shape index: {}]   ;;  %s534_s3 = inlined_call_operand.vmem [shape: bf16[128,128], index: 3, kind: input, shape index: {}]   ;;  %s535_s4 = inlined_call_operand.vmem [shape: f32[1,128], index: 4, kind: input, shape index: {}]   ;;  %s536_s6 = inlined_call_operand.vmem [shape: f32[8,1], index: 6, kind: input, shape index: {}]   ;;  %s537_s5 = inlined_call_operand.vmem [shape: bf16[8,128], index: 5, kind: input, shape index: {}]   ;;  %s538_s7 = inlined_call_operand.vmem [shape: f32[8,128], index: 7, kind: output, shape index: {}]  }
   0x1   :  { %v371_v0 = vld [vmem:[%s531_s1] sm:$0xff]  ;;  %v28_v2 = vld [vmem:[%s532_s0 + $0x8] sm:$0xff]  ;;  %v29_v4 = vld [vmem:[%s532_s0 + $0x10] sm:$0xff] }
   0x2   :  { %v27_v1 = vld [vmem:[%s532_s0] sm:$0xff]  ;;  %95 = vmatpush.bf16.msra.mxu0 %v371_v0  ;;  %v30_v5 = vld [vmem:[%s532_s0 + $0x18] sm:$0xff]  ;;  %v32_v8 = vld [vmem:[%s532_s0 + $0x28] sm:$0xff] }
   0x3   :  { %v43_v3 = vpack.c.bf16 %v28_v2, %v27_v1  ;;  %v44_v6 = vpack.c.bf16 %v30_v5, %v29_v4  ;;  %v31_v7 = vld [vmem:[%s532_s0 + $0x20] sm:$0xff]  ;;  %v33_v10 = vld [vmem:[%s532_s0 + $0x30] sm:$0xff]  ;;  %v34_v11 = vld [vmem:[%s532_s0 + $0x38] sm:$0xff] }
   0x4   :  { %v45_v9 = vpack.c.bf16 %v32_v8, %v31_v7  ;;  %v46_v12 = vpack.c.bf16 %v34_v11, %v33_v10  ;;  %v35_v13 = vld [vmem:[%s532_s0 + $0x40] sm:$0xff]  ;;  %v36_v14 = vld [vmem:[%s532_s0 + $0x48] sm:$0xff]  ;;  %v379_v16 = vld [vmem:[%s534_s3 + $0x38] sm:$0xff] }
   0x5   :  { %331 = vmatmul.msk.bf16.vlgmr.msra.gmra.mxu0 %vm63_vm0, %v43_v3  ;;  %v47_v15 = vpack.c.bf16 %v36_v14, %v35_v13  ;;  %229 = vmatpush.bf16.msra.mxu1 %v379_v16  ;;  %v37_v17 = vld [vmem:[%s532_s0 + $0x50] sm:$0xff]  ;;  %v38_v18 = vld [vmem:[%s532_s0 + $0x58] sm:$0xff]  ;;  %v377_v21 = vld [vmem:[%s534_s3 + $0x28] sm:$0xff] }
   0x6   :  { %380 = vmatpush.bf16.msra.mxu3 %v379_v16  ;;  %v48_v19 = vpack.c.bf16 %v38_v18, %v37_v17  ;;  %v378_v20 = vld [vmem:[%s534_s3 + $0x30] sm:$0xff]  ;;  %v376_v22 = vld [vmem:[%s534_s3 + $0x20] sm:$0xff]  ;;  %v40_v24 = vld [vmem:[%s532_s0 + $0x68] sm:$0xff] }
   0x7   :  { %v39_v23 = vld [vmem:[%s532_s0 + $0x60] sm:$0xff]  ;;  %v375_v25 = vld [vmem:[%s534_s3 + $0x18] sm:$0xff]  ;;  %v374_v27 = vld [vmem:[%s534_s3 + $0x10] sm:$0xff] }
   0x8   :  { %v49_v26 = vpack.c.bf16 %v40_v24, %v39_v23  ;;  %v373_v28 = vld [vmem:[%s534_s3 + $0x8] sm:$0xff]  ;;  %v372_v29 = vld [vmem:[%s534_s3] sm:$0xff]  ;;  %v41_v30 = vld [vmem:[%s532_s0 + $0x70] sm:$0xff] }
   0x9   :  { %230 = vmatpush.bf16.msra.mxu1 %v378_v20  ;;  %v42_v31 = vld [vmem:[%s532_s0 + $0x78] sm:$0xff]  ;;  %v390_v34 = vld [vmem:[%s533_s2] ss:$0 sm:$0xff] }
   0xa   :  { %381 = vmatpush.bf16.msra.mxu3 %v378_v20  ;;  %v50_v32 = vpack.c.bf16 %v42_v31, %v41_v30 }
   0xd   :  { %231 = vmatpush.bf16.msra.mxu1 %v377_v21 }
   0xe   :  { %382 = vmatpush.bf16.msra.mxu3 %v377_v21 }
  0x11   :  { %232 = vmatpush.bf16.msra.mxu1 %v376_v22 }
  0x12   :  { %383 = vmatpush.bf16.msra.mxu3 %v376_v22 }
  0x15   :  { %332 = vmatmul.msk.bf16.gmra.mxu0 %vm63_vm0, %v44_v6  ;;  %233 = vmatpush.bf16.msra.mxu1 %v375_v25 }
  0x16   :  { %384 = vmatpush.bf16.msra.mxu3 %v375_v25 }
  0x19   :  { %234 = vmatpush.bf16.msra.mxu1 %v374_v27 }
  0x1a   :  { %385 = vmatpush.bf16.msra.mxu3 %v374_v27  ;;  %v391_v27 = vld [vmem:[%s535_s4] ss:$0 sm:$0xff] }
  0x1d   :  { %235 = vmatpush.bf16.msra.mxu1 %v373_v28 }
  0x1e   :  { %386 = vmatpush.bf16.msra.mxu3 %v373_v28 }
  0x21   :  { %236 = vmatpush.bf16.msra.mxu1 %v372_v29 }
  0x22   :  { %387 = vmatpush.bf16.msra.mxu3 %v372_v29 }
  0x25   :  { %333 = vmatmul.msk.bf16.gmra.mxu0 %vm63_vm0, %v45_v9 }
  0x35   :  { %334 = vmatmul.msk.bf16.gmra.mxu0 %vm63_vm0, %v46_v12 }
  0x45   :  { %335 = vmatmul.msk.bf16.gmra.mxu0 %vm63_vm0, %v47_v15 }
  0x55   :  { %336 = vmatmul.msk.bf16.gmra.mxu0 %vm63_vm0, %v48_v19 }
  0x65   :  { %337 = vmatmul.msk.bf16.gmra.mxu0 %vm63_vm0, %v49_v26 }
  0x75   :  { %338 = vmatmul.msk.bf16.gmra.mxu0 %vm63_vm0, %v50_v32 }
  0x82   :  { %v97_v33 = vpop.f32.mrf.mxu0 }
  0x83   :  { %v98_v35 = vadd.f32 %v390_v34, %v97_v33 }
  0x85   :  { %v137_v38 = vmax.f32 %v98_v35, 0.0 }
  0x8a   :  { %v99_v36 = vpop.f32.mrf.mxu0 }
  0x8b   :  { %v100_v37 = vadd.f32 %v390_v34, %v99_v36 }
  0x8d   :  { %v138_v39 = vmax.f32 %v100_v37, 0.0 }
  0x8f   :  { %v153_v40 = vpack.c.bf16 %v138_v39, %v137_v38 }
  0x91   :  { %237 = vmatmul.bf16.vlgmr.msra.gmra.mxu1 %v153_v40 }
  0x92   :  { %v102_v41 = vpop.f32.mrf.mxu0 }
  0x93   :  { %v103_v42 = vadd.f32 %v390_v34, %v102_v41 }
  0x95   :  { %v139_v45 = vmax.f32 %v103_v42, 0.0 }
  0x9a   :  { %v104_v43 = vpop.f32.mrf.mxu0 }
  0x9b   :  { %v105_v44 = vadd.f32 %v390_v34, %v104_v43 }
  0x9d   :  { %v140_v46 = vmax.f32 %v105_v44, 0.0 }
  0x9f   :  { %v154_v47 = vpack.c.bf16 %v140_v46, %v139_v45 }
  0xa1   :  { %242 = vmatmul.bf16.gmra.mxu1 %v154_v47 }
  0xa2   :  { %v107_v48 = vpop.f32.mrf.mxu0 }
  0xa3   :  { %v108_v49 = vadd.f32 %v390_v34, %v107_v48 }
  0xa5   :  { %v141_v52 = vmax.f32 %v108_v49, 0.0 }
  0xaa   :  { %v109_v50 = vpop.f32.mrf.mxu0 }
  0xab   :  { %v110_v51 = vadd.f32 %v390_v34, %v109_v50 }
  0xad   :  { %v142_v53 = vmax.f32 %v110_v51, 0.0 }
  0xaf   :  { %v155_v54 = vpack.c.bf16 %v142_v53, %v141_v52 }
  0xb1   :  { %247 = vmatmul.bf16.gmra.mxu1 %v155_v54 }
  0xb2   :  { %v112_v55 = vpop.f32.mrf.mxu0 }
  0xb3   :  { %v113_v56 = vadd.f32 %v390_v34, %v112_v55 }
  0xb5   :  { %v143_v59 = vmax.f32 %v113_v56, 0.0 }
  0xba   :  { %v114_v57 = vpop.f32.mrf.mxu0 }
  0xbb   :  { %v115_v58 = vadd.f32 %v390_v34, %v114_v57 }
  0xbd   :  { %v144_v60 = vmax.f32 %v115_v58, 0.0 }
  0xbf   :  { %v156_v61 = vpack.c.bf16 %v144_v60, %v143_v59 }
  0xc1   :  { %252 = vmatmul.bf16.gmra.mxu1 %v156_v61 }
  0xc2   :  { %v117_v62 = vpop.f32.mrf.mxu0 }
  0xc3   :  { %v118_v63 = vadd.f32 %v390_v34, %v117_v62 }
  0xc5   :  { %v145_v2 = vmax.f32 %v118_v63, 0.0 }
  0xca   :  { %v119_v0 = vpop.f32.mrf.mxu0 }
  0xcb   :  { %v120_v1 = vadd.f32 %v390_v34, %v119_v0 }
  0xcd   :  { %v146_v3 = vmax.f32 %v120_v1, 0.0 }
  0xcf   :  { %v157_v4 = vpack.c.bf16 %v146_v3, %v145_v2 }
  0xd1   :  { %257 = vmatmul.bf16.gmra.mxu1 %v157_v4 }
  0xd2   :  { %v122_v5 = vpop.f32.mrf.mxu0 }
  0xd3   :  { %v123_v6 = vadd.f32 %v390_v34, %v122_v5 }
  0xd5   :  { %v147_v9 = vmax.f32 %v123_v6, 0.0 }
  0xda   :  { %v124_v7 = vpop.f32.mrf.mxu0 }
  0xdb   :  { %v125_v8 = vadd.f32 %v390_v34, %v124_v7 }
  0xdd   :  { %v148_v10 = vmax.f32 %v125_v8, 0.0 }
  0xdf   :  { %v158_v11 = vpack.c.bf16 %v148_v10, %v147_v9 }
  0xe1   :  { %262 = vmatmul.bf16.vlgmr.msra.gmra.mxu3 %v158_v11 }
  0xe2   :  { %v127_v12 = vpop.f32.mrf.mxu0 }
  0xe3   :  { %v128_v13 = vadd.f32 %v390_v34, %v127_v12 }
  0xe5   :  { %v149_v16 = vmax.f32 %v128_v13, 0.0 }
  0xea   :  { %v129_v14 = vpop.f32.mrf.mxu0 }
  0xeb   :  { %v130_v15 = vadd.f32 %v390_v34, %v129_v14 }
  0xed   :  { %v150_v17 = vmax.f32 %v130_v15, 0.0  ;;  %v303_v15 = vld [vmem:[%s536_s6] sm:$0xff] }
  0xef   :  { %v159_v18 = vpack.c.bf16 %v150_v17, %v149_v16  ;;  %v392_v17 = vmov 0  }
  0xf0   :  { %389 = vset.pattern.permute.xlu0 %v392_v17 }
  0xf1   :  { %267 = vmatmul.bf16.gmra.mxu3 %v159_v18  ;;  %306 = vperm.xlu0 %389, %v303_v15  }
  0xf2   :  { %v132_v19 = vpop.f32.mrf.mxu0 }
  0xf3   :  { %v133_v20 = vadd.f32 %v390_v34, %v132_v19 }
  0xf5   :  { %v151_v23 = vmax.f32 %v133_v20, 0.0 }
  0xfa   :  { %v134_v21 = vpop.f32.mrf.mxu0 }
  0xfb   :  { %v135_v22 = vadd.f32 %v390_v34, %v134_v21  ;;  %v294_v21 = vld [vmem:[%s537_s5] sm:$0xf] }
  0xfd   :  { %v152_v24 = vmax.f32 %v135_v22, 0.0 }
  0xff   :  { %v160_v25 = vpack.c.bf16 %v152_v24, %v151_v23 }
 0x101   :  { %272 = vmatmul.bf16.gmra.mxu3 %v160_v25 }
 0x10e   :  { %v238_v26 = vpop.f32.mrf.mxu1 }
 0x10f   :  { %v239_v28 = vadd.f32 %v391_v27, %v238_v26 }
 0x111   :  { %v278_v31 = vmax.f32 %v239_v28, 0.0 }
 0x116   :  { %v240_v29 = vpop.f32.mrf.mxu1 }
 0x117   :  { %v241_v30 = vadd.f32 %v391_v27, %v240_v29 }
 0x119   :  { %v279_v32 = vmax.f32 %v241_v30, 0.0 }
 0x11b   :  { %v295_v33 = vpack.c.bf16 %v279_v32, %v278_v31 }
 0x11e   :  { %v243_v35 = vpop.f32.mrf.mxu1 }
 0x11f   :  { %v244_v36 = vadd.f32 %v391_v27, %v243_v35 }
 0x121   :  { %v280_v34 = vmax.f32 %v244_v36, 0.0 }
 0x126   :  { %v245_v37 = vpop.f32.mrf.mxu1 }
 0x127   :  { %v246_v38 = vadd.f32 %v391_v27, %v245_v37 }
 0x129   :  { %v281_v39 = vmax.f32 %v246_v38, 0.0 }
 0x12b   :  { %v296_v40 = vpack.c.bf16 %v281_v39, %v280_v34 }
 0x12e   :  { %v248_v42 = vpop.f32.mrf.mxu1 }
 0x12f   :  { %v249_v16 = vadd.f32 %v391_v27, %v248_v42 }
 0x131   :  { %v282_v19 = vmax.f32 %v249_v16, 0.0 }
 0x136   :  { %v250_v45 = vpop.f32.mrf.mxu1 }
 0x137   :  { %v251_v13 = vadd.f32 %v391_v27, %v250_v45 }
 0x139   :  { %v283_v18 = vmax.f32 %v251_v13, 0.0 }
 0x13b   :  { %v297_v20 = vpack.c.bf16 %v283_v18, %v282_v19 }
 0x13e   :  { %v253_v47 = vpop.f32.mrf.mxu1 }
 0x13f   :  { %v254_v10 = vadd.f32 %v391_v27, %v253_v47 }
 0x141   :  { %v284_v12 = vmax.f32 %v254_v10, 0.0 }
 0x146   :  { %v255_v49 = vpop.f32.mrf.mxu1 }
 0x147   :  { %v256_v8 = vadd.f32 %v391_v27, %v255_v49 }
 0x149   :  { %v285_v11 = vmax.f32 %v256_v8, 0.0 }
 0x14b   :  { %v298_v14 = vpack.c.bf16 %v285_v11, %v284_v12 }
 0x14e   :  { %v258_v58 = vpop.f32.mrf.mxu1 }
 0x14f   :  { %v259_v5 = vadd.f32 %v391_v27, %v258_v58 }
 0x151   :  { %v286_v7 = vmax.f32 %v259_v5, 0.0 }
 0x156   :  { %v260_v1 = vpop.f32.mrf.mxu1 }
 0x157   :  { %v261_v3 = vadd.f32 %v391_v27, %v260_v1 }
 0x159   :  { %v287_v6 = vmax.f32 %v261_v3, 0.0 }
 0x15b   :  { %v299_v9 = vpack.c.bf16 %v287_v6, %v286_v7 }
 0x163   :  { %v307_v22 = vpop.permute.xlu0 %306 }
 0x164   :  { %v263_v41 = vpop.f32.mrf.mxu3 }
 0x165   :  { %v264_v63 = vadd.f32 %v391_v27, %v263_v41 }
 0x167   :  { %v288_v2 = vmax.f32 %v264_v63, 0.0 }
 0x16c   :  { %v265_v43 = vpop.f32.mrf.mxu3 }
 0x16d   :  { %v266_v61 = vadd.f32 %v391_v27, %v265_v43 }
 0x16f   :  { %v289_v0 = vmax.f32 %v266_v61, 0.0 }
 0x171   :  { %v300_v4 = vpack.c.bf16 %v289_v0, %v288_v2 }
 0x174   :  { %v268_v44 = vpop.f32.mrf.mxu3 }
 0x175   :  { %v269_v57 = vadd.f32 %v391_v27, %v268_v44 }
 0x177   :  { %v290_v60 = vmax.f32 %v269_v57, 0.0 }
 0x17c   :  { %v270_v46 = vpop.f32.mrf.mxu3 }
 0x17d   :  { %v271_v55 = vadd.f32 %v391_v27, %v270_v46 }
 0x17f   :  { %v291_v59 = vmax.f32 %v271_v55, 0.0 }
 0x181   :  { %v301_v62 = vpack.c.bf16 %v291_v59, %v290_v60 }
 0x184   :  { %v273_v48 = vpop.f32.mrf.mxu3 }
 0x185   :  { %v274_v50 = vadd.f32 %v391_v27, %v273_v48 }
 0x187   :  { %v292_v53 = vmax.f32 %v274_v50, 0.0 }
 0x18c   :  { %v275_v51 = vpop.f32.mrf.mxu3 }
 0x18d   :  { %v276_v52 = vadd.f32 %v391_v27, %v275_v51 }
 0x18f   :  { %v293_v54 = vmax.f32 %v276_v52, 0.0 }
 0x191   :  { %v302_v56 = vpack.c.bf16 %v293_v54, %v292_v53 }
 0x193   :  { %309 = vmatpush.bf16.xpose.msra.mxu2 %v302_v56 }
 0x19b   :  { %310 = vmatpush.bf16.xpose.msra.mxu2 %v301_v62 }
 0x1a3   :  { %311 = vmatpush.bf16.xpose.msra.mxu2 %v300_v4 }
 0x1ab   :  { %312 = vmatpush.bf16.xpose.msra.mxu2 %v299_v9 }
 0x1b3   :  { %313 = vmatpush.bf16.xpose.msra.mxu2 %v298_v14 }
 0x1bb   :  { %314 = vmatpush.bf16.xpose.msra.mxu2 %v297_v20 }
 0x1c3   :  { %315 = vmatpush.bf16.xpose.msra.mxu2 %v296_v40 }
 0x1cb   :  { %316 = vmatpush.bf16.xpose.msra.mxu2 %v295_v33 }
 0x1d2   :  { %317 = vmatmul.bf16.vlgmr.msra.gmra.mxu2 %v294_v21 }
 0x255   :  { %v318_v23 = vpop.f32.mrf.mxu2 }
 0x256   :  { %v319_v24 = vadd.f32 %v318_v23, %v307_v22 }
 0x258   :  { %322 = vst [vmem:[%s538_s7] sm:$0xff] %v319_v24 }
 0x25d   :  { %v320_v25 = vpop.f32.mrf.mxu2 }

// kernel: fwd.1
= control target key start
LH: loop header
LB: loop body
LE: loop exit
PB: predicated region body
PF: predicated region fallthrough
CT: control target
= control target key end

     0   :  { %vm63_vm0 = vcmask 130048   ;;  %s531_s1 = inlined_call_operand.vmem [shape: bf16[16,128], index: 1, kind: input, shape index: {}]   ;;  %s532_s0 = inlined_call_operand.vmem [shape: f32[128,16], index: 0, kind: input, shape index: {}]   ;;  %s533_s2 = inlined_call_operand.vmem [shape: f32[1,128], index: 2, kind: input, shape index: {}]   ;;  %s534_s3 = inlined_call_operand.vmem [shape: bf16[128,128], index: 3, kind: input, shape index: {}]   ;;  %s535_s4 = inlined_call_operand.vmem [shape: f32[1,128], index: 4, kind: input, shape index: {}]   ;;  %s536_s6 = inlined_call_operand.vmem [shape: f32[8,1], index: 6, kind: input, shape index: {}]   ;;  %s537_s5 = inlined_call_operand.vmem [shape: bf16[8,128], index: 5, kind: input, shape index: {}]   ;;  %s538_s7 = inlined_call_operand.vmem [shape: f32[8,128], index: 7, kind: output, shape index: {}]  }
   0x1   :  { %v371_v0 = vld [vmem:[%s531_s1] sm:$0xff]  ;;  %v28_v2 = vld [vmem:[%s532_s0 + $0x8] sm:$0xff]  ;;  %v29_v4 = vld [vmem:[%s532_s0 + $0x10] sm:$0xff] }
   0x2   :  { %v27_v1 = vld [vmem:[%s532_s0] sm:$0xff]  ;;  %95 = vmatpush.bf16.msra.mxu0 %v371_v0  ;;  %v30_v5 = vld [vmem:[%s532_s0 + $0x18] sm:$0xff]  ;;  %v32_v8 = vld [vmem:[%s532_s0 + $0x28] sm:$0xff] }
   0x3   :  { %v43_v3 = vpack.c.bf16 %v28_v2, %v27_v1  ;;  %v44_v6 = vpack.c.bf16 %v30_v5, %v29_v4  ;;  %v31_v7 = vld [vmem:[%s532_s0 + $0x20] sm:$0xff]  ;;  %v33_v10 = vld [vmem:[%s532_s0 + $0x30] sm:$0xff]  ;;  %v34_v11 = vld [vmem:[%s532_s0 + $0x38] sm:$0xff] }
   0x4   :  { %v45_v9 = vpack.c.bf16 %v32_v8, %v31_v7  ;;  %v46_v12 = vpack.c.bf16 %v34_v11, %v33_v10  ;;  %v35_v13 = vld [vmem:[%s532_s0 + $0x40] sm:$0xff]  ;;  %v36_v14 = vld [vmem:[%s532_s0 + $0x48] sm:$0xff]  ;;  %v379_v16 = vld [vmem:[%s534_s3 + $0x38] sm:$0xff] }
   0x5   :  { %331 = vmatmul.msk.bf16.vlgmr.msra.gmra.mxu0 %vm63_vm0, %v43_v3  ;;  %v47_v15 = vpack.c.bf16 %v36_v14, %v35_v13  ;;  %229 = vmatpush.bf16.msra.mxu1 %v379_v16  ;;  %v37_v17 = vld [vmem:[%s532_s0 + $0x50] sm:$0xff]  ;;  %v38_v18 = vld [vmem:[%s532_s0 + $0x58] sm:$0xff]  ;;  %v377_v21 = vld [vmem:[%s534_s3 + $0x28] sm:$0xff] }
   0x6   :  { %380 = vmatpush.bf16.msra.mxu3 %v379_v16  ;;  %v48_v19 = vpack.c.bf16 %v38_v18, %v37_v17  ;;  %v378_v20 = vld [vmem:[%s534_s3 + $0x30] sm:$0xff]  ;;  %v376_v22 = vld [vmem:[%s534_s3 + $0x20] sm:$0xff]  ;;  %v40_v24 = vld [vmem:[%s532_s0 + $0x68] sm:$0xff] }
   0x7   :  { %v39_v23 = vld [vmem:[%s532_s0 + $0x60] sm:$0xff]  ;;  %v375_v25 = vld [vmem:[%s534_s3 + $0x18] sm:$0xff]  ;;  %v374_v27 = vld [vmem:[%s534_s3 + $0x10] sm:$0xff] }
   0x8   :  { %v49_v26 = vpack.c.bf16 %v40_v24, %v39_v23  ;;  %v373_v28 = vld [vmem:[%s534_s3 + $0x8] sm:$0xff]  ;;  %v372_v29 = vld [vmem:[%s534_s3] sm:$0xff]  ;;  %v41_v30 = vld [vmem:[%s532_s0 + $0x70] sm:$0xff] }
   0x9   :  { %230 = vmatpush.bf16.msra.mxu1 %v378_v20  ;;  %v42_v31 = vld [vmem:[%s532_s0 + $0x78] sm:$0xff]  ;;  %v390_v34 = vld [vmem:[%s533_s2] ss:$0 sm:$0xff] }
   0xa   :  { %381 = vmatpush.bf16.msra.mxu3 %v378_v20  ;;  %v50_v32 = vpack.c.bf16 %v42_v31, %v41_v30 }
   0xd   :  { %231 = vmatpush.bf16.msra.mxu1 %v377_v21 }
   0xe   :  { %382 = vmatpush.bf16.msra.mxu3 %v377_v21 }
  0x11   :  { %232 = vmatpush.bf16.msra.mxu1 %v376_v22 }
  0x12   :  { %383 = vmatpush.bf16.msra.mxu3 %v376_v22 }
  0x15   :  { %332 = vmatmul.msk.bf16.gmra.mxu0 %vm63_vm0, %v44_v6  ;;  %233 = vmatpush.bf16.msra.mxu1 %v375_v25 }
  0x16   :  { %384 = vmatpush.bf16.msra.mxu3 %v375_v25 }
  0x19   :  { %234 = vmatpush.bf16.msra.mxu1 %v374_v27 }
  0x1a   :  { %385 = vmatpush.bf16.msra.mxu3 %v374_v27  ;;  %v391_v27 = vld [vmem:[%s535_s4] ss:$0 sm:$0xff] }
  0x1d   :  { %235 = vmatpush.bf16.msra.mxu1 %v373_v28 }
  0x1e   :  { %386 = vmatpush.bf16.msra.mxu3 %v373_v28 }
  0x21   :  { %236 = vmatpush.bf16.msra.mxu1 %v372_v29 }
  0x22   :  { %387 = vmatpush.bf16.msra.mxu3 %v372_v29 }
  0x25   :  { %333 = vmatmul.msk.bf16.gmra.mxu0 %vm63_vm0, %v45_v9 }
  0x35   :  { %334 = vmatmul.msk.bf16.gmra.mxu0 %vm63_vm0, %v46_v12 }
  0x45   :  { %335 = vmatmul.msk.bf16.gmra.mxu0 %vm63_vm0, %v47_v15 }
  0x55   :  { %336 = vmatmul.msk.bf16.gmra.mxu0 %vm63_vm0, %v48_v19 }
  0x65   :  { %337 = vmatmul.msk.bf16.gmra.mxu0 %vm63_vm0, %v49_v26 }
  0x75   :  { %338 = vmatmul.msk.bf16.gmra.mxu0 %vm63_vm0, %v50_v32 }
  0x82   :  { %v97_v33 = vpop.f32.mrf.mxu0 }
  0x83   :  { %v98_v35 = vadd.f32 %v390_v34, %v97_v33 }
  0x85   :  { %v137_v38 = vmax.f32 %v98_v35, 0.0 }
  0x8a   :  { %v99_v36 = vpop.f32.mrf.mxu0 }
  0x8b   :  { %v100_v37 = vadd.f32 %v390_v34, %v99_v36 }
  0x8d   :  { %v138_v39 = vmax.f32 %v100_v37, 0.0 }
  0x8f   :  { %v153_v40 = vpack.c.bf16 %v138_v39, %v137_v38 }
  0x91   :  { %237 = vmatmul.bf16.vlgmr.msra.gmra.mxu1 %v153_v40 }
  0x92   :  { %v102_v41 = vpop.f32.mrf.mxu0 }
  0x93   :  { %v103_v42 = vadd.f32 %v390_v34, %v102_v41 }
  0x95   :  { %v139_v45 = vmax.f32 %v103_v42, 0.0 }
  0x9a   :  { %v104_v43 = vpop.f32.mrf.mxu0 }
  0x9b   :  { %v105_v44 = vadd.f32 %v390_v34, %v104_v43 }
  0x9d   :  { %v140_v46 = vmax.f32 %v105_v44, 0.0 }
  0x9f   :  { %v154_v47 = vpack.c.bf16 %v140_v46, %v139_v45 }
  0xa1   :  { %242 = vmatmul.bf16.gmra.mxu1 %v154_v47 }
  0xa2   :  { %v107_v48 = vpop.f32.mrf.mxu0 }
  0xa3   :  { %v108_v49 = vadd.f32 %v390_v34, %v107_v48 }
  0xa5   :  { %v141_v52 = vmax.f32 %v108_v49, 0.0 }
  0xaa   :  { %v109_v50 = vpop.f32.mrf.mxu0 }
  0xab   :  { %v110_v51 = vadd.f32 %v390_v34, %v109_v50 }
  0xad   :  { %v142_v53 = vmax.f32 %v110_v51, 0.0 }
  0xaf   :  { %v155_v54 = vpack.c.bf16 %v142_v53, %v141_v52 }
  0xb1   :  { %247 = vmatmul.bf16.gmra.mxu1 %v155_v54 }
  0xb2   :  { %v112_v55 = vpop.f32.mrf.mxu0 }
  0xb3   :  { %v113_v56 = vadd.f32 %v390_v34, %v112_v55 }
  0xb5   :  { %v143_v59 = vmax.f32 %v113_v56, 0.0 }
  0xba   :  { %v114_v57 = vpop.f32.mrf.mxu0 }
  0xbb   :  { %v115_v58 = vadd.f32 %v390_v34, %v114_v57 }
  0xbd   :  { %v144_v60 = vmax.f32 %v115_v58, 0.0 }
  0xbf   :  { %v156_v61 = vpack.c.bf16 %v144_v60, %v143_v59 }
  0xc1   :  { %252 = vmatmul.bf16.gmra.mxu1 %v156_v61 }
  0xc2   :  { %v117_v62 = vpop.f32.mrf.mxu0 }
  0xc3   :  { %v118_v63 = vadd.f32 %v390_v34, %v117_v62 }
  0xc5   :  { %v145_v2 = vmax.f32 %v118_v63, 0.0 }
  0xca   :  { %v119_v0 = vpop.f32.mrf.mxu0 }
  0xcb   :  { %v120_v1 = vadd.f32 %v390_v34, %v119_v0 }
  0xcd   :  { %v146_v3 = vmax.f32 %v120_v1, 0.0 }
  0xcf   :  { %v157_v4 = vpack.c.bf16 %v146_v3, %v145_v2 }
  0xd1   :  { %257 = vmatmul.bf16.gmra.mxu1 %v157_v4 }
  0xd2   :  { %v122_v5 = vpop.f32.mrf.mxu0 }
  0xd3   :  { %v123_v6 = vadd.f32 %v390_v34, %v122_v5 }
  0xd5   :  { %v147_v9 = vmax.f32 %v123_v6, 0.0 }
  0xda   :  { %v124_v7 = vpop.f32.mrf.mxu0 }
  0xdb   :  { %v125_v8 = vadd.f32 %v390_v34, %v124_v7 }
  0xdd   :  { %v148_v10 = vmax.f32 %v125_v8, 0.0 }
  0xdf   :  { %v158_v11 = vpack.c.bf16 %v148_v10, %v147_v9 }
  0xe1   :  { %262 = vmatmul.bf16.vlgmr.msra.gmra.mxu3 %v158_v11 }
  0xe2   :  { %v127_v12 = vpop.f32.mrf.mxu0 }
  0xe3   :  { %v128_v13 = vadd.f32 %v390_v34, %v127_v12 }
  0xe5   :  { %v149_v16 = vmax.f32 %v128_v13, 0.0 }
  0xea   :  { %v129_v14 = vpop.f32.mrf.mxu0 }
  0xeb   :  { %v130_v15 = vadd.f32 %v390_v34, %v129_v14 }
  0xed   :  { %v150_v17 = vmax.f32 %v130_v15, 0.0  ;;  %v303_v15 = vld [vmem:[%s536_s6] sm:$0xff] }
  0xef   :  { %v159_v18 = vpack.c.bf16 %v150_v17, %v149_v16  ;;  %v392_v17 = vmov 0  }
  0xf0   :  { %389 = vset.pattern.permute.xlu0 %v392_v17 }
  0xf1   :  { %267 = vmatmul.bf16.gmra.mxu3 %v159_v18  ;;  %306 = vperm.xlu0 %389, %v303_v15  }
  0xf2   :  { %v132_v19 = vpop.f32.mrf.mxu0 }
  0xf3   :  { %v133_v20 = vadd.f32 %v390_v34, %v132_v19 }
  0xf5   :  { %v151_v23 = vmax.f32 %v133_v20, 0.0 }
  0xfa   :  { %v134_v21 = vpop.f32.mrf.mxu0 }
  0xfb   :  { %v135_v22 = vadd.f32 %v390_v34, %v134_v21  ;;  %v294_v21 = vld [vmem:[%s537_s5] sm:$0xf] }
  0xfd   :  { %v152_v24 = vmax.f32 %v135_v22, 0.0 }
  0xff   :  { %v160_v25 = vpack.c.bf16 %v152_v24, %v151_v23 }
 0x101   :  { %272 = vmatmul.bf16.gmra.mxu3 %v160_v25 }
 0x10e   :  { %v238_v26 = vpop.f32.mrf.mxu1 }
 0x10f   :  { %v239_v28 = vadd.f32 %v391_v27, %v238_v26 }
 0x111   :  { %v278_v31 = vmax.f32 %v239_v28, 0.0 }
 0x116   :  { %v240_v29 = vpop.f32.mrf.mxu1 }
 0x117   :  { %v241_v30 = vadd.f32 %v391_v27, %v240_v29 }
 0x119   :  { %v279_v32 = vmax.f32 %v241_v30, 0.0 }
 0x11b   :  { %v295_v33 = vpack.c.bf16 %v279_v32, %v278_v31 }
 0x11e   :  { %v243_v35 = vpop.f32.mrf.mxu1 }
 0x11f   :  { %v244_v36 = vadd.f32 %v391_v27, %v243_v35 }
 0x121   :  { %v280_v34 = vmax.f32 %v244_v36, 0.0 }
 0x126   :  { %v245_v37 = vpop.f32.mrf.mxu1 }
 0x127   :  { %v246_v38 = vadd.f32 %v391_v27, %v245_v37 }
 0x129   :  { %v281_v39 = vmax.f32 %v246_v38, 0.0 }
 0x12b   :  { %v296_v40 = vpack.c.bf16 %v281_v39, %v280_v34 }
 0x12e   :  { %v248_v42 = vpop.f32.mrf.mxu1 }
 0x12f   :  { %v249_v16 = vadd.f32 %v391_v27, %v248_v42 }
 0x131   :  { %v282_v19 = vmax.f32 %v249_v16, 0.0 }
 0x136   :  { %v250_v45 = vpop.f32.mrf.mxu1 }
 0x137   :  { %v251_v13 = vadd.f32 %v391_v27, %v250_v45 }
 0x139   :  { %v283_v18 = vmax.f32 %v251_v13, 0.0 }
 0x13b   :  { %v297_v20 = vpack.c.bf16 %v283_v18, %v282_v19 }
 0x13e   :  { %v253_v47 = vpop.f32.mrf.mxu1 }
 0x13f   :  { %v254_v10 = vadd.f32 %v391_v27, %v253_v47 }
 0x141   :  { %v284_v12 = vmax.f32 %v254_v10, 0.0 }
 0x146   :  { %v255_v49 = vpop.f32.mrf.mxu1 }
 0x147   :  { %v256_v8 = vadd.f32 %v391_v27, %v255_v49 }
 0x149   :  { %v285_v11 = vmax.f32 %v256_v8, 0.0 }
 0x14b   :  { %v298_v14 = vpack.c.bf16 %v285_v11, %v284_v12 }
 0x14e   :  { %v258_v58 = vpop.f32.mrf.mxu1 }
 0x14f   :  { %v259_v5 = vadd.f32 %v391_v27, %v258_v58 }
 0x151   :  { %v286_v7 = vmax.f32 %v259_v5, 0.0 }
 0x156   :  { %v260_v1 = vpop.f32.mrf.mxu1 }
 0x157   :  { %v261_v3 = vadd.f32 %v391_v27, %v260_v1 }
 0x159   :  { %v287_v6 = vmax.f32 %v261_v3, 0.0 }
 0x15b   :  { %v299_v9 = vpack.c.bf16 %v287_v6, %v286_v7 }
 0x163   :  { %v307_v22 = vpop.permute.xlu0 %306 }
 0x164   :  { %v263_v41 = vpop.f32.mrf.mxu3 }
 0x165   :  { %v264_v63 = vadd.f32 %v391_v27, %v263_v41 }
 0x167   :  { %v288_v2 = vmax.f32 %v264_v63, 0.0 }
 0x16c   :  { %v265_v43 = vpop.f32.mrf.mxu3 }
 0x16d   :  { %v266_v61 = vadd.f32 %v391_v27, %v265_v43 }
 0x16f   :  { %v289_v0 = vmax.f32 %v266_v61, 0.0 }
 0x171   :  { %v300_v4 = vpack.c.bf16 %v289_v0, %v288_v2 }
 0x174   :  { %v268_v44 = vpop.f32.mrf.mxu3 }
 0x175   :  { %v269_v57 = vadd.f32 %v391_v27, %v268_v44 }
 0x177   :  { %v290_v60 = vmax.f32 %v269_v57, 0.0 }
 0x17c   :  { %v270_v46 = vpop.f32.mrf.mxu3 }
 0x17d   :  { %v271_v55 = vadd.f32 %v391_v27, %v270_v46 }
 0x17f   :  { %v291_v59 = vmax.f32 %v271_v55, 0.0 }
 0x181   :  { %v301_v62 = vpack.c.bf16 %v291_v59, %v290_v60 }
 0x184   :  { %v273_v48 = vpop.f32.mrf.mxu3 }
 0x185   :  { %v274_v50 = vadd.f32 %v391_v27, %v273_v48 }
 0x187   :  { %v292_v53 = vmax.f32 %v274_v50, 0.0 }
 0x18c   :  { %v275_v51 = vpop.f32.mrf.mxu3 }
 0x18d   :  { %v276_v52 = vadd.f32 %v391_v27, %v275_v51 }
 0x18f   :  { %v293_v54 = vmax.f32 %v276_v52, 0.0 }
 0x191   :  { %v302_v56 = vpack.c.bf16 %v293_v54, %v292_v53 }
 0x193   :  { %309 = vmatpush.bf16.xpose.msra.mxu2 %v302_v56 }
 0x19b   :  { %310 = vmatpush.bf16.xpose.msra.mxu2 %v301_v62 }
 0x1a3   :  { %311 = vmatpush.bf16.xpose.msra.mxu2 %v300_v4 }
 0x1ab   :  { %312 = vmatpush.bf16.xpose.msra.mxu2 %v299_v9 }
 0x1b3   :  { %313 = vmatpush.bf16.xpose.msra.mxu2 %v298_v14 }
 0x1bb   :  { %314 = vmatpush.bf16.xpose.msra.mxu2 %v297_v20 }
 0x1c3   :  { %315 = vmatpush.bf16.xpose.msra.mxu2 %v296_v40 }
 0x1cb   :  { %316 = vmatpush.bf16.xpose.msra.mxu2 %v295_v33 }
 0x1d2   :  { %317 = vmatmul.bf16.vlgmr.msra.gmra.mxu2 %v294_v21 }
 0x255   :  { %v318_v23 = vpop.f32.mrf.mxu2 }
 0x256   :  { %v319_v24 = vadd.f32 %v318_v23, %v307_v22 }
 0x258   :  { %322 = vst [vmem:[%s538_s7] sm:$0xff] %v319_v24 }
 0x25d   :  { %v320_v25 = vpop.f32.mrf.mxu2 }

</bundles_post_ra>
